<compile_context>
chip_gen: v6e
topology: v6e:2x2x1
jax: 0.10.0
libtpu: 0.0.40
codegen_flags: <defaults>
</compile_context>

<pallas_src>
import functools

import jax
import jax.numpy as jnp
from jax import lax
from jax.experimental import pallas as pl
from jax.experimental.pallas import tpu as pltpu


def _attention_kernel(q_ref, k_ref, v_ref, wq_ref, wk_ref, wv_ref, o_ref, *,
                      nb_head, size_per_head, batch_block, seq_len, use_bf16):
    """One block of `batch_block` batch elements per grid step.

    q_ref/k_ref/v_ref    : (Bt, L, d_in)   VMEM
    wq_ref/wk_ref/wv_ref : (d_in, H*D)     VMEM (constant block -> resident)
    o_ref                : (Bt, L, H*D)    VMEM
    """
    H, D = nb_head, size_per_head
    Bt, L = batch_block, seq_len
    mxu_dtype = jnp.bfloat16 if use_bf16 else jnp.float32
    scale = 1.0 / (float(D) ** 0.5)

    # Fold the batch block into the sublane dimension: one projection matmul
    # per tensor for the whole block instead of Bt small ones.
    q_in = q_ref[...].reshape(Bt * L, q_ref.shape[-1]).astype(mxu_dtype)
    k_in = k_ref[...].reshape(Bt * L, k_ref.shape[-1]).astype(mxu_dtype)
    v_in = v_ref[...].reshape(Bt * L, v_ref.shape[-1]).astype(mxu_dtype)

    # 1/sqrt(D) folded into Q once here (instead of scaling every score tile).
    q = jnp.dot(q_in, wq_ref[...].astype(mxu_dtype),
                preferred_element_type=jnp.float32) * scale
    k = jnp.dot(k_in, wk_ref[...].astype(mxu_dtype),
                preferred_element_type=jnp.float32)
    v = jnp.dot(v_in, wv_ref[...].astype(mxu_dtype),
                preferred_element_type=jnp.float32)

    # Causal mask: compare + select only (no float cast / multiply).
    row = lax.broadcasted_iota(jnp.int32, (L, L), 0)   # query index
    col = lax.broadcasted_iota(jnp.int32, (L, L), 1)   # key index
    causal = col > row

    # Contract the D axis of both operands directly (no explicit kh.T).
    qk_dims = (((1,), (1,)), ((), ()))

    # TODO(synk): for large L, replace the monolithic (L, L) score tile with
    # flash-style KV tiling (online softmax) to stay inside v7x's 64 MiB VMEM.
    for b in range(Bt):                      # static, trace-time loops
        qb = q[b * L:(b + 1) * L]
        kb = k[b * L:(b + 1) * L]
        vb = v[b * L:(b + 1) * L]
        head_outs = []
        for h in range(H):
            qh = qb[:, h * D:(h + 1) * D]
            kh = kb[:, h * D:(h + 1) * D]
            vh = vb[:, h * D:(h + 1) * D]

            s = lax.dot_general(qh.astype(mxu_dtype), kh.astype(mxu_dtype),
                                qk_dims, preferred_element_type=jnp.float32)
            # PyTorch Mask(): subtract 1e12 where key index > query index.
            s = jnp.where(causal, s - 1e12, s)

            # Numerically stable softmax; reciprocal runs on the EUP slot.
            s = s - jnp.max(s, axis=-1, keepdims=True)
            p = jnp.exp(s)
            p = p * pl.reciprocal(jnp.sum(p, axis=-1, keepdims=True),
                                  approx=True)

            head_outs.append(
                jnp.dot(p.astype(mxu_dtype), vh.astype(mxu_dtype),
                        preferred_element_type=jnp.float32))

        # Single lane-contiguous (L, H*D) store per batch element instead of
        # H narrow 16-lane stores at nonzero lane offsets.
        o_ref[b] = jnp.concatenate(head_outs, axis=-1).astype(o_ref.dtype)


def attention_forward(q_seq, k_seq, v_seq, wq, wk, wv, nb_head, size_per_head,
                      *, batch_block=None, use_bf16=False):
    B, L, dq = q_seq.shape
    dk = k_seq.shape[-1]
    dv = v_seq.shape[-1]
    HD = nb_head * size_per_head

    if batch_block is None:
        # Pack as much batch as possible per grid step (per-step pipeline
        # overhead ~0.35us would otherwise dominate this small compute), but
        # keep 2 grid steps when B allows so both v7x TensorCores stay busy.
        batch_block = B // 2 if (B % 2 == 0 and B >= 4) else B
    assert B % batch_block == 0, "batch must divide evenly into batch blocks"
    num_blocks = B // batch_block

    kernel = functools.partial(
        _attention_kernel, nb_head=nb_head, size_per_head=size_per_head,
        batch_block=batch_block, seq_len=L, use_bf16=use_bf16)

    return pl.pallas_call(
        kernel,
        out_shape=jax.ShapeDtypeStruct((B, L, HD), jnp.float32),
        grid=(num_blocks,),
        in_specs=[
            pl.BlockSpec((batch_block, L, dq), lambda i: (i, 0, 0)),
            pl.BlockSpec((batch_block, L, dk), lambda i: (i, 0, 0)),
            pl.BlockSpec((batch_block, L, dv), lambda i: (i, 0, 0)),
            pl.BlockSpec((dq, HD), lambda i: (0, 0)),
            pl.BlockSpec((dk, HD), lambda i: (0, 0)),
            pl.BlockSpec((dv, HD), lambda i: (0, 0)),
        ],
        out_specs=pl.BlockSpec((batch_block, L, HD), lambda i: (i, 0, 0)),
        compiler_params=pltpu.CompilerParams(
            dimension_semantics=("parallel",)),
    )(q_seq, k_seq, v_seq, wq, wk, wv)


def attention_reference(q_seq, k_seq, v_seq, wq, wk, wv, nb_head, size_per_head):
    """Pure-JAX transcription of the PyTorch forward, for verification."""
    B, L, _ = q_seq.shape
    H, D = nb_head, size_per_head
    q = (q_seq @ wq).reshape(B, L, H, D).transpose(0, 2, 1, 3)
    k = (k_seq @ wk).reshape(B, L, H, D).transpose(0, 2, 1, 3)
    v = (v_seq @ wv).reshape(B, L, H, D).transpose(0, 2, 1, 3)
    a = jnp.einsum("bhqd,bhkd->bhqk", q, k) / (D ** 0.5)
    qi = jnp.arange(L)[:, None]
    ki = jnp.arange(L)[None, :]
    a = a - (ki > qi).astype(jnp.float32) * 1e12
    p = jax.nn.softmax(a, axis=-1)
    o = jnp.einsum("bhqk,bhkd->bhqd", p, v)
    return o.transpose(0, 2, 1, 3).reshape(B, L, H * D)


if __name__ == "__main__":
    # Module hyper-parameters (small shapes consistent with the forward).
    nb_head = 2
    size_per_head = 16
    max_len = 8                      # sequence length L == max_len
    d_in = 32                        # att_size[i][-1] for all three inputs
    batch = 2

    key = jax.random.PRNGKey(0)
    kq, kk, kv, kwq, kwk, kwv = jax.random.split(key, 6)

    wq = jax.random.normal(kwq, (d_in, nb_head * size_per_head), jnp.float32)
    wk = jax.random.normal(kwk, (d_in, nb_head * size_per_head), jnp.float32)
    wv = jax.random.normal(kwv, (d_in, nb_head * size_per_head), jnp.float32)

    q_seq = jax.random.normal(kq, (batch, max_len, d_in), jnp.float32)
    k_seq = jax.random.normal(kk, (batch, max_len, d_in), jnp.float32)
    v_seq = jax.random.normal(kv, (batch, max_len, d_in), jnp.float32)

    # f32 path (exact module semantics).
    out = attention_forward(q_seq, k_seq, v_seq, wq, wk, wv,
                            nb_head, size_per_head)
    out = jax.block_until_ready(out)

    ref = attention_reference(q_seq, k_seq, v_seq, wq, wk, wv,
                              nb_head, size_per_head)
    assert out.shape == (batch, max_len, nb_head * size_per_head)
    # Tolerance covers pl.reciprocal(approx=True) in the softmax denominator.
    assert jnp.allclose(out, ref, rtol=2e-2, atol=2e-2), "mismatch vs reference"

    # bf16-MXU variant (v6e / v7x feedback): run once to show it compiles and
    # produces finite output; accumulation stays in f32.
    out_bf16 = attention_forward(q_seq, k_seq, v_seq, wq, wk, wv,
                                 nb_head, size_per_head, use_bf16=True)
    out_bf16 = jax.block_until_ready(out_bf16)
    assert out_bf16.shape == out.shape
    assert bool(jnp.all(jnp.isfinite(out_bf16)))

    print("KERNEL_OK")
</pallas_src>

<mosaic_0001>
module attributes {stable_mosaic.version = 11 : i64} {
  func.func @_attention_kernel(%arg0: i32, %arg1: memref<2x8x32xf32, #tpu.memory_space<vmem>>, %arg2: memref<2x8x32xf32, #tpu.memory_space<vmem>>, %arg3: memref<2x8x32xf32, #tpu.memory_space<vmem>>, %arg4: memref<32x32xf32, #tpu.memory_space<vmem>>, %arg5: memref<32x32xf32, #tpu.memory_space<vmem>>, %arg6: memref<32x32xf32, #tpu.memory_space<vmem>>, %arg7: memref<2x8x32xf32, #tpu.memory_space<vmem>>) attributes {dimension_semantics = [#tpu.dimension_semantics<parallel>], iteration_bounds = array<i64: 1>, scalar_prefetch = 0 : i64, scratch_operands = 0 : i64, tpu.core_type = #tpu.core_type<tc>, window_params = [{transform_indices = @transform_0, window_bounds = array<i64: 2, 8, 32>}, {transform_indices = @transform_1, window_bounds = array<i64: 2, 8, 32>}, {transform_indices = @transform_2, window_bounds = array<i64: 2, 8, 32>}, {pipeline_mode = #tpu.pipeline_mode<synchronous>, transform_indices = @transform_3, window_bounds = array<i64: 32, 32>}, {pipeline_mode = #tpu.pipeline_mode<synchronous>, transform_indices = @transform_4, window_bounds = array<i64: 32, 32>}, {pipeline_mode = #tpu.pipeline_mode<synchronous>, transform_indices = @transform_5, window_bounds = array<i64: 32, 32>}, {transform_indices = @transform_6, window_bounds = array<i64: 2, 8, 32>}]} {
    %c0 = arith.constant 0 : index
    %c0_0 = arith.constant 0 : index
    %c0_1 = arith.constant 0 : index
    %0 = vector.load %arg1[%c0, %c0_0, %c0_1] : memref<2x8x32xf32, #tpu.memory_space<vmem>>, vector<2x8x32xf32>
    %1 = vector.shape_cast %0 : vector<2x8x32xf32> to vector<16x32xf32>
    %c0_2 = arith.constant 0 : index
    %c0_3 = arith.constant 0 : index
    %c0_4 = arith.constant 0 : index
    %2 = vector.load %arg2[%c0_2, %c0_3, %c0_4] : memref<2x8x32xf32, #tpu.memory_space<vmem>>, vector<2x8x32xf32>
    %3 = vector.shape_cast %2 : vector<2x8x32xf32> to vector<16x32xf32>
    %c0_5 = arith.constant 0 : index
    %c0_6 = arith.constant 0 : index
    %c0_7 = arith.constant 0 : index
    %4 = vector.load %arg3[%c0_5, %c0_6, %c0_7] : memref<2x8x32xf32, #tpu.memory_space<vmem>>, vector<2x8x32xf32>
    %5 = vector.shape_cast %4 : vector<2x8x32xf32> to vector<16x32xf32>
    %c0_8 = arith.constant 0 : index
    %c0_9 = arith.constant 0 : index
    %6 = vector.load %arg4[%c0_8, %c0_9] : memref<32x32xf32, #tpu.memory_space<vmem>>, vector<32x32xf32>
    %cst = arith.constant dense<0.000000e+00> : vector<16x32xf32>
    %7 = tpu.matmul %1, %6, %cst {dimension_numbers = #tpu.dot_dimension_numbers<[1], [0], [0], [1], [0, 0, 1, 1], [], []>} : vector<16x32xf32>, vector<32x32xf32>, vector<16x32xf32> -> vector<16x32xf32>
    %cst_10 = arith.constant 2.500000e-01 : f32
    %8 = vector.broadcast %cst_10 : f32 to vector<16x32xf32>
    %9 = arith.mulf %7, %8 : vector<16x32xf32>
    %c0_11 = arith.constant 0 : index
    %c0_12 = arith.constant 0 : index
    %10 = vector.load %arg5[%c0_11, %c0_12] : memref<32x32xf32, #tpu.memory_space<vmem>>, vector<32x32xf32>
    %cst_13 = arith.constant dense<0.000000e+00> : vector<16x32xf32>
    %11 = tpu.matmul %3, %10, %cst_13 {dimension_numbers = #tpu.dot_dimension_numbers<[1], [0], [0], [1], [0, 0, 1, 1], [], []>} : vector<16x32xf32>, vector<32x32xf32>, vector<16x32xf32> -> vector<16x32xf32>
    %c0_14 = arith.constant 0 : index
    %c0_15 = arith.constant 0 : index
    %12 = vector.load %arg6[%c0_14, %c0_15] : memref<32x32xf32, #tpu.memory_space<vmem>>, vector<32x32xf32>
    %cst_16 = arith.constant dense<0.000000e+00> : vector<16x32xf32>
    %13 = tpu.matmul %5, %12, %cst_16 {dimension_numbers = #tpu.dot_dimension_numbers<[1], [0], [0], [1], [0, 0, 1, 1], [], []>} : vector<16x32xf32>, vector<32x32xf32>, vector<16x32xf32> -> vector<16x32xf32>
    %14 = tpu.iota {dimensions = array<i32: 0>} : vector<8x8xi32>
    %15 = tpu.iota {dimensions = array<i32: 1>} : vector<8x8xi32>
    %16 = arith.cmpi sgt, %15, %14 : vector<8x8xi32>
    %17 = vector.extract_strided_slice %9 {offsets = [0, 0], sizes = [8, 32], strides = [1, 1]} : vector<16x32xf32> to vector<8x32xf32>
    %18 = vector.extract_strided_slice %11 {offsets = [0, 0], sizes = [8, 32], strides = [1, 1]} : vector<16x32xf32> to vector<8x32xf32>
    %19 = vector.extract_strided_slice %13 {offsets = [0, 0], sizes = [8, 32], strides = [1, 1]} : vector<16x32xf32> to vector<8x32xf32>
    %20 = vector.extract_strided_slice %17 {offsets = [0, 0], sizes = [8, 16], strides = [1, 1]} : vector<8x32xf32> to vector<8x16xf32>
    %21 = vector.extract_strided_slice %18 {offsets = [0, 0], sizes = [8, 16], strides = [1, 1]} : vector<8x32xf32> to vector<8x16xf32>
    %22 = vector.extract_strided_slice %19 {offsets = [0, 0], sizes = [8, 16], strides = [1, 1]} : vector<8x32xf32> to vector<8x16xf32>
    %cst_17 = arith.constant dense<0.000000e+00> : vector<8x8xf32>
    %23 = tpu.matmul %20, %21, %cst_17 {dimension_numbers = #tpu.dot_dimension_numbers<[1], [1], [0], [0], [0, 0, 1, 0], [], []>} : vector<8x16xf32>, vector<8x16xf32>, vector<8x8xf32> -> vector<8x8xf32>
    %cst_18 = arith.constant 9.99999995E+11 : f32
    %24 = vector.broadcast %cst_18 : f32 to vector<8x8xf32>
    %25 = arith.subf %23, %24 : vector<8x8xf32>
    %26 = arith.select %16, %25, %23 : vector<8x8xi1>, vector<8x8xf32>
    %cst_19 = arith.constant dense<0xFF800000> : vector<8xf32>
    %27 = vector.multi_reduction <maximumf>, %26, %cst_19 [1] : vector<8x8xf32> to vector<8xf32>
    %28 = vector.shape_cast %27 : vector<8xf32> to vector<8x1xf32>
    %29 = vector.broadcast %28 : vector<8x1xf32> to vector<8x8xf32>
    %30 = arith.subf %26, %29 : vector<8x8xf32>
    %31 = math.exp %30 : vector<8x8xf32>
    %cst_20 = arith.constant dense<0.000000e+00> : vector<8xf32>
    %32 = vector.multi_reduction <add>, %31, %cst_20 [1] : vector<8x8xf32> to vector<8xf32>
    %33 = vector.shape_cast %32 : vector<8xf32> to vector<8x1xf32>
    %34 = tpu.reciprocal %33 {approx = true} : vector<8x1xf32> -> vector<8x1xf32>
    %35 = vector.broadcast %34 : vector<8x1xf32> to vector<8x8xf32>
    %36 = arith.mulf %31, %35 : vector<8x8xf32>
    %cst_21 = arith.constant dense<0.000000e+00> : vector<8x16xf32>
    %37 = tpu.matmul %36, %22, %cst_21 {dimension_numbers = #tpu.dot_dimension_numbers<[1], [0], [0], [1], [0, 0, 1, 1], [], []>} : vector<8x8xf32>, vector<8x16xf32>, vector<8x16xf32> -> vector<8x16xf32>
    %38 = vector.extract_strided_slice %17 {offsets = [0, 16], sizes = [8, 16], strides = [1, 1]} : vector<8x32xf32> to vector<8x16xf32>
    %39 = vector.extract_strided_slice %18 {offsets = [0, 16], sizes = [8, 16], strides = [1, 1]} : vector<8x32xf32> to vector<8x16xf32>
    %40 = vector.extract_strided_slice %19 {offsets = [0, 16], sizes = [8, 16], strides = [1, 1]} : vector<8x32xf32> to vector<8x16xf32>
    %cst_22 = arith.constant dense<0.000000e+00> : vector<8x8xf32>
    %41 = tpu.matmul %38, %39, %cst_22 {dimension_numbers = #tpu.dot_dimension_numbers<[1], [1], [0], [0], [0, 0, 1, 0], [], []>} : vector<8x16xf32>, vector<8x16xf32>, vector<8x8xf32> -> vector<8x8xf32>
    %cst_23 = arith.constant 9.99999995E+11 : f32
    %42 = vector.broadcast %cst_23 : f32 to vector<8x8xf32>
    %43 = arith.subf %41, %42 : vector<8x8xf32>
    %44 = arith.select %16, %43, %41 : vector<8x8xi1>, vector<8x8xf32>
    %cst_24 = arith.constant dense<0xFF800000> : vector<8xf32>
    %45 = vector.multi_reduction <maximumf>, %44, %cst_24 [1] : vector<8x8xf32> to vector<8xf32>
    %46 = vector.shape_cast %45 : vector<8xf32> to vector<8x1xf32>
    %47 = vector.broadcast %46 : vector<8x1xf32> to vector<8x8xf32>
    %48 = arith.subf %44, %47 : vector<8x8xf32>
    %49 = math.exp %48 : vector<8x8xf32>
    %cst_25 = arith.constant dense<0.000000e+00> : vector<8xf32>
    %50 = vector.multi_reduction <add>, %49, %cst_25 [1] : vector<8x8xf32> to vector<8xf32>
    %51 = vector.shape_cast %50 : vector<8xf32> to vector<8x1xf32>
    %52 = tpu.reciprocal %51 {approx = true} : vector<8x1xf32> -> vector<8x1xf32>
    %53 = vector.broadcast %52 : vector<8x1xf32> to vector<8x8xf32>
    %54 = arith.mulf %49, %53 : vector<8x8xf32>
    %cst_26 = arith.constant dense<0.000000e+00> : vector<8x16xf32>
    %55 = tpu.matmul %54, %40, %cst_26 {dimension_numbers = #tpu.dot_dimension_numbers<[1], [0], [0], [1], [0, 0, 1, 1], [], []>} : vector<8x8xf32>, vector<8x16xf32>, vector<8x16xf32> -> vector<8x16xf32>
    %56 = tpu.concatenate %37, %55 in 1 : vector<8x16xf32>, vector<8x16xf32> -> vector<8x32xf32>
    %c0_27 = arith.constant 0 : index
    %c0_28 = arith.constant 0 : index
    %c0_29 = arith.constant 0 : index
    %57 = vector.load %arg7[%c0_27, %c0_28, %c0_29] : memref<2x8x32xf32, #tpu.memory_space<vmem>>, vector<1x8x32xf32>
    %58 = vector.shape_cast %57 : vector<1x8x32xf32> to vector<8x32xf32>
    %59 = vector.shape_cast %56 : vector<8x32xf32> to vector<1x8x32xf32>
    tpu.vector_store %arg7[%c0_27, %c0_28, %c0_29], %59 {strides = array<i32>} : memref<2x8x32xf32, #tpu.memory_space<vmem>>, vector<1x8x32xf32>,
    %60 = vector.extract_strided_slice %9 {offsets = [8, 0], sizes = [8, 32], strides = [1, 1]} : vector<16x32xf32> to vector<8x32xf32>
    %61 = vector.extract_strided_slice %11 {offsets = [8, 0], sizes = [8, 32], strides = [1, 1]} : vector<16x32xf32> to vector<8x32xf32>
    %62 = vector.extract_strided_slice %13 {offsets = [8, 0], sizes = [8, 32], strides = [1, 1]} : vector<16x32xf32> to vector<8x32xf32>
    %63 = vector.extract_strided_slice %60 {offsets = [0, 0], sizes = [8, 16], strides = [1, 1]} : vector<8x32xf32> to vector<8x16xf32>
    %64 = vector.extract_strided_slice %61 {offsets = [0, 0], sizes = [8, 16], strides = [1, 1]} : vector<8x32xf32> to vector<8x16xf32>
    %65 = vector.extract_strided_slice %62 {offsets = [0, 0], sizes = [8, 16], strides = [1, 1]} : vector<8x32xf32> to vector<8x16xf32>
    %cst_30 = arith.constant dense<0.000000e+00> : vector<8x8xf32>
    %66 = tpu.matmul %63, %64, %cst_30 {dimension_numbers = #tpu.dot_dimension_numbers<[1], [1], [0], [0], [0, 0, 1, 0], [], []>} : vector<8x16xf32>, vector<8x16xf32>, vector<8x8xf32> -> vector<8x8xf32>
    %cst_31 = arith.constant 9.99999995E+11 : f32
    %67 = vector.broadcast %cst_31 : f32 to vector<8x8xf32>
    %68 = arith.subf %66, %67 : vector<8x8xf32>
    %69 = arith.select %16, %68, %66 : vector<8x8xi1>, vector<8x8xf32>
    %cst_32 = arith.constant dense<0xFF800000> : vector<8xf32>
    %70 = vector.multi_reduction <maximumf>, %69, %cst_32 [1] : vector<8x8xf32> to vector<8xf32>
    %71 = vector.shape_cast %70 : vector<8xf32> to vector<8x1xf32>
    %72 = vector.broadcast %71 : vector<8x1xf32> to vector<8x8xf32>
    %73 = arith.subf %69, %72 : vector<8x8xf32>
    %74 = math.exp %73 : vector<8x8xf32>
    %cst_33 = arith.constant dense<0.000000e+00> : vector<8xf32>
    %75 = vector.multi_reduction <add>, %74, %cst_33 [1] : vector<8x8xf32> to vector<8xf32>
    %76 = vector.shape_cast %75 : vector<8xf32> to vector<8x1xf32>
    %77 = tpu.reciprocal %76 {approx = true} : vector<8x1xf32> -> vector<8x1xf32>
    %78 = vector.broadcast %77 : vector<8x1xf32> to vector<8x8xf32>
    %79 = arith.mulf %74, %78 : vector<8x8xf32>
    %cst_34 = arith.constant dense<0.000000e+00> : vector<8x16xf32>
    %80 = tpu.matmul %79, %65, %cst_34 {dimension_numbers = #tpu.dot_dimension_numbers<[1], [0], [0], [1], [0, 0, 1, 1], [], []>} : vector<8x8xf32>, vector<8x16xf32>, vector<8x16xf32> -> vector<8x16xf32>
    %81 = vector.extract_strided_slice %60 {offsets = [0, 16], sizes = [8, 16], strides = [1, 1]} : vector<8x32xf32> to vector<8x16xf32>
    %82 = vector.extract_strided_slice %61 {offsets = [0, 16], sizes = [8, 16], strides = [1, 1]} : vector<8x32xf32> to vector<8x16xf32>
    %83 = vector.extract_strided_slice %62 {offsets = [0, 16], sizes = [8, 16], strides = [1, 1]} : vector<8x32xf32> to vector<8x16xf32>
    %cst_35 = arith.constant dense<0.000000e+00> : vector<8x8xf32>
    %84 = tpu.matmul %81, %82, %cst_35 {dimension_numbers = #tpu.dot_dimension_numbers<[1], [1], [0], [0], [0, 0, 1, 0], [], []>} : vector<8x16xf32>, vector<8x16xf32>, vector<8x8xf32> -> vector<8x8xf32>
    %cst_36 = arith.constant 9.99999995E+11 : f32
    %85 = vector.broadcast %cst_36 : f32 to vector<8x8xf32>
    %86 = arith.subf %84, %85 : vector<8x8xf32>
    %87 = arith.select %16, %86, %84 : vector<8x8xi1>, vector<8x8xf32>
    %cst_37 = arith.constant dense<0xFF800000> : vector<8xf32>
    %88 = vector.multi_reduction <maximumf>, %87, %cst_37 [1] : vector<8x8xf32> to vector<8xf32>
    %89 = vector.shape_cast %88 : vector<8xf32> to vector<8x1xf32>
    %90 = vector.broadcast %89 : vector<8x1xf32> to vector<8x8xf32>
    %91 = arith.subf %87, %90 : vector<8x8xf32>
    %92 = math.exp %91 : vector<8x8xf32>
    %cst_38 = arith.constant dense<0.000000e+00> : vector<8xf32>
    %93 = vector.multi_reduction <add>, %92, %cst_38 [1] : vector<8x8xf32> to vector<8xf32>
    %94 = vector.shape_cast %93 : vector<8xf32> to vector<8x1xf32>
    %95 = tpu.reciprocal %94 {approx = true} : vector<8x1xf32> -> vector<8x1xf32>
    %96 = vector.broadcast %95 : vector<8x1xf32> to vector<8x8xf32>
    %97 = arith.mulf %92, %96 : vector<8x8xf32>
    %cst_39 = arith.constant dense<0.000000e+00> : vector<8x16xf32>
    %98 = tpu.matmul %97, %83, %cst_39 {dimension_numbers = #tpu.dot_dimension_numbers<[1], [0], [0], [1], [0, 0, 1, 1], [], []>} : vector<8x8xf32>, vector<8x16xf32>, vector<8x16xf32> -> vector<8x16xf32>
    %99 = tpu.concatenate %80, %98 in 1 : vector<8x16xf32>, vector<8x16xf32> -> vector<8x32xf32>
    %c1 = arith.constant 1 : index
    %c0_40 = arith.constant 0 : index
    %c0_41 = arith.constant 0 : index
    %100 = vector.load %arg7[%c1, %c0_40, %c0_41] : memref<2x8x32xf32, #tpu.memory_space<vmem>>, vector<1x8x32xf32>
    %101 = vector.shape_cast %100 : vector<1x8x32xf32> to vector<8x32xf32>
    %102 = vector.shape_cast %99 : vector<8x32xf32> to vector<1x8x32xf32>
    tpu.vector_store %arg7[%c1, %c0_40, %c0_41], %102 {strides = array<i32>} : memref<2x8x32xf32, #tpu.memory_space<vmem>>, vector<1x8x32xf32>,
    return
  }
  func.func @transform_0(%arg0: i32) -> (i32, i32, i32) {
    %c0_i32 = arith.constant 0 : i32
    %c0_i32_0 = arith.constant 0 : i32
    %c0_i32_1 = arith.constant 0 : i32
    return %arg0, %c0_i32, %c0_i32_0 : i32, i32, i32
  }
  func.func @transform_1(%arg0: i32) -> (i32, i32, i32) {
    %c0_i32 = arith.constant 0 : i32
    %c0_i32_0 = arith.constant 0 : i32
    %c0_i32_1 = arith.constant 0 : i32
    return %arg0, %c0_i32, %c0_i32_0 : i32, i32, i32
  }
  func.func @transform_2(%arg0: i32) -> (i32, i32, i32) {
    %c0_i32 = arith.constant 0 : i32
    %c0_i32_0 = arith.constant 0 : i32
    %c0_i32_1 = arith.constant 0 : i32
    return %arg0, %c0_i32, %c0_i32_0 : i32, i32, i32
  }
  func.func @transform_3(%arg0: i32) -> (i32, i32) {
    %c0_i32 = arith.constant 0 : i32
    %c0_i32_0 = arith.constant 0 : i32
    %c0_i32_1 = arith.constant 0 : i32
    return %c0_i32, %c0_i32_0 : i32, i32
  }
  func.func @transform_4(%arg0: i32) -> (i32, i32) {
    %c0_i32 = arith.constant 0 : i32
    %c0_i32_0 = arith.constant 0 : i32
    %c0_i32_1 = arith.constant 0 : i32
    return %c0_i32, %c0_i32_0 : i32, i32
  }
  func.func @transform_5(%arg0: i32) -> (i32, i32) {
    %c0_i32 = arith.constant 0 : i32
    %c0_i32_0 = arith.constant 0 : i32
    %c0_i32_1 = arith.constant 0 : i32
    return %c0_i32, %c0_i32_0 : i32, i32
  }
  func.func @transform_6(%arg0: i32) -> (i32, i32, i32) {
    %c0_i32 = arith.constant 0 : i32
    %c0_i32_0 = arith.constant 0 : i32
    %c0_i32_1 = arith.constant 0 : i32
    return %arg0, %c0_i32, %c0_i32_0 : i32, i32, i32
  }
}

</mosaic_0001>

<bundles_post_ra>
// kernel: tpu_custom_call.1
= control target key start
LH: loop header
LB: loop body
LE: loop exit
PB: predicated region body
PF: predicated region fallthrough
CT: control target
= control target key end

     0   :  { %11 = vsyncpa [#allocation3], 0  ;;  %s1536_s0 = inlined_call_operand.hbm [shape: f32[2,8,32], index: 0, kind: input, shape index: {}]   ;;  %s1537_s1 = inlined_call_operand.hbm [shape: f32[2,8,32], index: 1, kind: input, shape index: {}]   ;;  %s1538_s2 = inlined_call_operand.hbm [shape: f32[2,8,32], index: 2, kind: input, shape index: {}]   ;;  %s1539_s3 = inlined_call_operand.hbm [shape: f32[32,32], index: 3, kind: input, shape index: {}]   ;;  %s1540_s4 = inlined_call_operand.hbm [shape: f32[32,32], index: 4, kind: input, shape index: {}]   ;;  %s1541_s5 = inlined_call_operand.hbm [shape: f32[32,32], index: 5, kind: input, shape index: {}]   ;;  %s1542_s6 = inlined_call_operand.hbm [shape: f32[2,8,32], index: 6, kind: output, shape index: {}]  }
   0x1   :  { %12 = vsyncpa [#allocation6], 0 }
   0x2   :  { %13 = vsyncpa [#allocation9], 0 }
   0x3   :  { %14 = vsyncpa [#allocation12], 0 }
   0x4   :  { %15 = vsyncpa [#allocation4], 0  ;;  %s1378_s21 = smov [#allocation5]   ;;  %s1379_s23 = smov [#allocation8]  }
   0x5   :  { %s33_s22 = sshll.u32 %s1378_s21, 4  ;;  %s57_s24 = sshll.u32 %s1379_s23, 4  ;;  %s34_s22 = int_to_ptr.vmem [resolvable:$true] %s33_s22  ;;  %s58_s24 = int_to_ptr.vmem [resolvable:$true] %s57_s24 }
   0x6   :  { %s1236_s25 = scalar_lea.vmem %s34_s22, 256  ;;  %p1241_p1 = scmp.lt.s32.totalorder %s34_s22, %s34_s22 }
   0x7   :  { %p1237_p0 = scmp.ne.s32.totalorder %s34_s22, %s1236_s25  ;;  %p1242_p2 = scmp.lt.s32.totalorder %s1236_s25, %s1236_s25 }
   0x9   :  { %p1243_p3 = por %p1242_p2, %p1241_p1 }
   0xb   :  { %p1244_p4 = pnand %p1243_p3, %p1237_p0 }
   0xd   :  { %1247 = shalt.err (!%p1244_p4)
}
   0xe   :  { %s1380_s26 = smov 128   ;;  %s1381_s27 = smov 8  }
   0xf   :  { %39 = dma.hbm_to_vmem [thread:$0]  %s1537_s1, 256, %s34_s22, [#allocation6], %s1380_s26, %s1380_s26, %s1381_s27  }
  0x10   :  { %s1256_s30 = scalar_lea.vmem %s58_s24, 512  ;;  %p1261_p6 = scmp.lt.s32.totalorder %s58_s24, %s58_s24 }
  0x11   :  { %p1257_p5 = scmp.ne.s32.totalorder %s58_s24, %s1256_s30  ;;  %p1262_p7 = scmp.lt.s32.totalorder %s1256_s30, %s1256_s30 }
  0x13   :  { %p1263_p8 = por %p1262_p7, %p1261_p6 }
  0x15   :  { %p1264_p9 = pnand %p1263_p8, %p1257_p5 }
  0x17   :  { %1267 = shalt.err (!%p1264_p9)
}
  0x18   :  { %63 = dma.hbm_to_vmem [thread:$0]  %s1539_s3, 512, %s58_s24, [#allocation9], %s1380_s26, %s1380_s26, %s1381_s27  }
  0x19   :  { %s1382_s9 = smov [#allocation2]   ;;  %s1383_s11 = smov [#allocation7]  }
  0x1a   :  { %s21_s10 = sshll.u32 %s1382_s9, 4  ;;  %s45_s12 = sshll.u32 %s1383_s11, 4  ;;  %s22_s10 = int_to_ptr.vmem [resolvable:$true] %s21_s10  ;;  %s46_s12 = int_to_ptr.vmem [resolvable:$true] %s45_s12 }
  0x1b   :  { %s1276_s1 = scalar_lea.vmem %s22_s10, 256  ;;  %p1281_p11 = scmp.lt.s32.totalorder %s22_s10, %s22_s10 }
  0x1c   :  { %p1277_p10 = scmp.ne.s32.totalorder %s22_s10, %s1276_s1  ;;  %p1282_p12 = scmp.lt.s32.totalorder %s1276_s1, %s1276_s1 }
  0x1e   :  { %p1283_p13 = por %p1282_p12, %p1281_p11 }
  0x20   :  { %p1284_p0 = pnand %p1283_p13, %p1277_p10 }
  0x22   :  { %1287 = shalt.err (!%p1284_p0)
}
  0x23   :  { %27 = dma.hbm_to_vmem [thread:$0]  %s1536_s0, 256, %s22_s10, [#allocation3], %s1380_s26, %s1380_s26, %s1381_s27  }
  0x24   :  { %s1296_s3 = scalar_lea.vmem %s46_s12, 256  ;;  %p1301_p2 = scmp.lt.s32.totalorder %s46_s12, %s46_s12 }
  0x25   :  { %p1297_p1 = scmp.ne.s32.totalorder %s46_s12, %s1296_s3  ;;  %p1302_p3 = scmp.lt.s32.totalorder %s1296_s3, %s1296_s3 }
  0x27   :  { %p1303_p4 = por %p1302_p3, %p1301_p2 }
  0x29   :  { %p1304_p5 = pnand %p1303_p4, %p1297_p1 }
  0x2b   :  { %1307 = shalt.err (!%p1304_p5)
}
  0x2c   :  { %51 = dma.hbm_to_vmem [thread:$0]  %s1538_s2, 256, %s46_s12, [#allocation6], %s1380_s26, %s1380_s26, %s1381_s27  }
  0x2d   :  { %s1384_s17 = smov [#allocation10]   ;;  %s1385_s19 = smov [#allocation11]  }
  0x2e   :  { %s69_s18 = sshll.u32 %s1384_s17, 4  ;;  %s81_s20 = sshll.u32 %s1385_s19, 4  ;;  %s70_s18 = int_to_ptr.vmem [resolvable:$true] %s69_s18  ;;  %s82_s20 = int_to_ptr.vmem [resolvable:$true] %s81_s20 }
  0x2f   :  { %s1316_s0 = scalar_lea.vmem %s70_s18, 512  ;;  %p1321_p7 = scmp.lt.s32.totalorder %s70_s18, %s70_s18 }
  0x30   :  { %p1317_p6 = scmp.ne.s32.totalorder %s70_s18, %s1316_s0  ;;  %p1322_p8 = scmp.lt.s32.totalorder %s1316_s0, %s1316_s0 }
  0x32   :  { %p1323_p9 = por %p1322_p8, %p1321_p7 }
  0x34   :  { %p1324_p10 = pnand %p1323_p9, %p1317_p6 }
  0x36   :  { %1327 = shalt.err (!%p1324_p10)
}
  0x37   :  { %75 = dma.hbm_to_vmem [thread:$0]  %s1540_s4, 512, %s70_s18, [#allocation9], %s1380_s26, %s1380_s26, %s1381_s27  }
  0x38   :  { %s1336_s2 = scalar_lea.vmem %s82_s20, 512  ;;  %p1341_p12 = scmp.lt.s32.totalorder %s82_s20, %s82_s20 }
  0x39   :  { %p1337_p11 = scmp.ne.s32.totalorder %s82_s20, %s1336_s2  ;;  %p1342_p13 = scmp.lt.s32.totalorder %s1336_s2, %s1336_s2 }
  0x3b   :  { %p1343_p0 = por %p1342_p13, %p1341_p12 }
  0x3d   :  { %p1344_p1 = pnand %p1343_p0, %p1337_p11 }
  0x3f   :  { %1347 = shalt.err (!%p1344_p1)
}
  0x40   :  { %87 = dma.hbm_to_vmem [thread:$0]  %s1541_s5, 512, %s82_s20, [#allocation12], %s1380_s26, %s1380_s26, %s1381_s27  }
  0x41   :  { %1368 = dma.done.wait [#allocation3], 256  }
  0x42   :  { %1369 = vsyncadd [#allocation3], 4294967040 }
  0x43   :  { %1370 = dma.done.wait [#allocation6], 512  }
  0x44   :  { %1371 = vsyncadd [#allocation6], 4294966784 }
  0x45   :  { %1372 = dma.done.wait [#allocation9], 1024  }
  0x46   :  { %1373 = vsyncadd [#allocation9], 4294966272 }
  0x47   :  { %1374 = dma.done.wait [#allocation12], 512  }
  0x48   :  { %1375 = vsyncadd [#allocation12], 4294966784  ;;  %v115_v0 = vld [vmem:[#allocation8 + $0x18] sm:$0xff]  ;;  %v114_v2 = vld [vmem:[#allocation8 + $0x10] sm:$0xff]  ;;  %vm116_vm0 = vcmask 261120   ;;  %v1386_v12 = vmov 0.0   ;;  %v370_v31 = vlaneseq }
  0x49   :  { %v203_v1 = vld [vmem:[#allocation10 + $0x18] sm:$0xff]  ;;  %1126 = vmatprep.subr.mxu0 %v115_v0  ;;  %v202_v3 = vld [vmem:[#allocation10 + $0x10] sm:$0xff]  ;;  %v113_v4 = vld [vmem:[#allocation8 + $0x8] sm:$0xff]  ;;  %vm1387_vm1 = vmmov 0   ;;  %vm375_vm2 = vcmask 130048   ;;  %s1388_s4 = smov 112  }
  0x4a   :  { %1137 = vmatprep.subr.mxu1 %v203_v1  ;;  %1127 = vmatpush3.msra.mxu0 %v115_v0  ;;  %v201_v5 = vld [vmem:[#allocation10 + $0x8] sm:$0xff]  ;;  %v112_v6 = vld [vmem:[#allocation8] sm:$0xff]  ;;  %v106_v8 = vld [vmem:[#allocation2] sm:$0xff]  ;;  %v371_v32 = vshrl.u32 %v370_v31, 7  ;;  %v373_v33 = vand.u32 127, %v370_v31  ;;  %vm454_vm4 = vcmask 64512  }
  0x4b   :  { %1138 = vmatpush3.msra.mxu1 %v203_v1  ;;  %1128 = vmatprep.subr.mxu0 %v114_v2  ;;  %v200_v7 = vld [vmem:[#allocation10] sm:$0xff]  ;;  %v107_v10 = vld [vmem:[#allocation2 + $0x8] sm:$0xff]  ;;  %v109_v11 = vld [vmem:[#allocation5 + $0x8] sm:$0xff]  ;;  %s1389_s5 = smov 16   ;;  %s1390_s25 = smov [#allocation13]  }
  0x4c   :  { %1139 = vmatprep.subr.mxu1 %v202_v3  ;;  %1129 = vmatpush3.msra.mxu0 %v114_v2  ;;  %v108_v9 = vld [vmem:[#allocation5] sm:$0xff]  ;;  %v288_v13 = vld [vmem:[#allocation11 + $0x18] sm:$0xff]  ;;  %v287_v14 = vld [vmem:[#allocation11 + $0x10] sm:$0xff]  ;;  %vm374_vm3 = vcmp.gt.s32.totalorder %v373_v33, %v371_v32  ;;  %s1055_s28 = sshll.u32 %s1390_s25, 4  ;;  %s1056_s28 = int_to_ptr.vmem [resolvable:$true] %s1055_s28 }
  0x4d   :  { %1140 = vmatpush3.msra.mxu1 %v202_v3  ;;  %1130 = vmatprep.subr.mxu0 %v113_v4  ;;  %v286_v15 = vld [vmem:[#allocation11 + $0x8] sm:$0xff]  ;;  %v285_v16 = vld [vmem:[#allocation11] sm:$0xff]  ;;  %v110_v17 = vld [vmem:[#allocation7] sm:$0xff]  ;;  %s1348_s29 = scalar_lea.vmem %s1056_s28, 256  ;;  %p1353_p3 = scmp.lt.s32.totalorder %s1056_s28, %s1056_s28 }
  0x4e   :  { %1141 = vmatprep.subr.mxu1 %v201_v5  ;;  %1131 = vmatpush3.msra.mxu0 %v113_v4  ;;  %v111_v18 = vld [vmem:[#allocation7 + $0x8] sm:$0xff]  ;;  %p1349_p2 = scmp.ne.s32.totalorder %s1056_s28, %s1348_s29  ;;  %p1354_p4 = scmp.lt.s32.totalorder %s1348_s29, %s1348_s29 }
  0x4f   :  { %1142 = vmatpush3.msra.mxu1 %v201_v5  ;;  %1132 = vmatprep.subr.mxu0 %v112_v6 }
  0x50   :  { %1143 = vmatprep.subr.mxu1 %v200_v7  ;;  %1133 = vmatpush3.msra.mxu0 %v112_v6  ;;  %p1355_p5 = por %p1354_p4, %p1353_p3 }
  0x51   :  { %1134 = vmatprep.mubr.msk.f32.mxu0 %vm116_vm0, %v106_v8  ;;  %1144 = vmatpush3.msra.mxu1 %v200_v7 }
  0x52   :  { %1145 = vmatprep.mubr.msk.f32.mxu1 %vm116_vm0, %v108_v9  ;;  %1135 = vmatmul.mubr.msk.f32.vlgmr.msra.gmra.mxu0 %vm116_vm0, %v107_v10  ;;  %p1356_p6 = pnand %p1355_p5, %p1349_p2 }
  0x53   :  { %1146 = vmatmul.mubr.msk.f32.vlgmr.msra.gmra.mxu1 %vm116_vm0, %v109_v11  ;;  %1159 = vmatprep.subr.mxu1 %v1386_v12 }
  0x54   :  { %1161 = vmatprep.mubr.msk.f32.mxu1 %vm1387_vm1, %v1386_v12  ;;  %1148 = vmatprep.subr.mxu0 %v288_v13 }
  0x55   :  { %1149 = vmatpush3.msra.mxu0 %v288_v13  ;;  %1156 = vmatprep.mubr.msk.f32.mxu0 %vm116_vm0, %v110_v17 }
  0x56   :  { %1150 = vmatprep.subr.mxu0 %v287_v14 }
  0x57   :  { %1151 = vmatpush3.msra.mxu0 %v287_v14 }
  0x58   :  { %1152 = vmatprep.subr.mxu0 %v286_v15 }
  0x59   :  { %1153 = vmatpush3.msra.mxu0 %v286_v15 }
  0x5a   :  { %1154 = vmatprep.subr.mxu0 %v285_v16 }
  0x5b   :  { %1155 = vmatpush3.msra.mxu0 %v285_v16 }
  0x5c   :  { %1169 = vmatprep.subr.mxu0 %v1386_v12  ;;  %1157 = vmatmul.mubr.msk.f32.vlgmr.msra.gmra.mxu0 %vm116_vm0, %v111_v18 }
  0x5d   :  { %1171 = vmatprep.mubr.msk.f32.mxu0 %vm1387_vm1, %v1386_v12 }
 0x112   :  { %v1136_v19 = vpop.f32.mrf.mxu0 }
 0x113   :  { %v1147_v20 = vpop.f32.mrf.mxu1  ;;  %v199_v21 = vmul.f32 0.25, %v1136_v19 }
 0x114   :  { %877 = vrot.lane.b32.xlu1 %v1147_v20, %s1388_s4  ;;  %v189_v22 = vpop.f32.mrf.mxu0 }
 0x115   :  { %v276_v23 = vpop.f32.mrf.mxu1  ;;  %v198_v24 = vmul.f32 0.25, %v189_v22 }
 0x116   :  { %541 = vrot.lane.b32.xlu0 %v276_v23, %s1388_s4  ;;  %1160 = vmatpush3.xpose.msk.msra.mxu1 %vm375_vm2, %v276_v23 }
 0x117   :  { %1164 = vmatprep.subr.mxu1 %v1386_v12 }
 0x118   :  { %875 = vrot.lane.b32.xlu1 %v199_v21, %s1388_s4 }
 0x119   :  { %1162 = vmatmul.mubr.msk.f32.vlgmr.msra.gmra.mxu1 %vm375_vm2, %v198_v24 }
 0x11a   :  { %539 = vrot.lane.b32.xlu0 %v198_v24, %s1388_s4  ;;  %1166 = vmatprep.mubr.msk.f32.mxu1 %vm1387_vm1, %v1386_v12 }
 0x11c   :  { %v1495_v29 = vpop.f32.mrf.mxu0 }
 0x11e   :  { %v361_v30 = vpop.f32.mrf.mxu0 }
 0x11f   :  { %1165 = vmatpush3.msra.mxu1 %v361_v30 }
 0x120   :  { %1174 = vmatprep.subr.mxu1 %v1386_v12 }
 0x186   :  { %v878_v27 = vpop.permute.xlu1 %877 }
 0x188   :  { %v542_v25 = vpop.permute.xlu0 %541 }
 0x189   :  { %1170 = vmatpush3.xpose.msk.msra.mxu0 %vm375_vm2, %v542_v25 }
 0x18a   :  { %1179 = vmatprep.subr.mxu0 %v1386_v12  ;;  %v876_v28 = vpop.permute.xlu1 %875 }
 0x18c   :  { %v540_v26 = vpop.permute.xlu0 %539 }
 0x18d   :  { %1172 = vmatmul.mubr.msk.f32.vlgmr.msra.gmra.mxu0 %vm375_vm2, %v540_v26 }
 0x18e   :  { %1180 = vmatpush3.xpose.msk.msra.mxu0 %vm375_vm2, %v1147_v20  ;;  %1181 = vmatprep.mubr.msk.f32.mxu0 %vm1387_vm1, %v1386_v12 }
 0x18f   :  { %1189 = vmatprep.subr.mxu0 %v1386_v12 }
 0x191   :  { %1182 = vmatmul.mubr.msk.f32.vlgmr.msra.gmra.mxu0 %vm375_vm2, %v199_v21 }
 0x192   :  { %1190 = vmatpush3.xpose.msk.msra.mxu0 %vm375_vm2, %v878_v27  ;;  %1191 = vmatprep.mubr.msk.f32.mxu0 %vm1387_vm1, %v1386_v12 }
 0x195   :  { %1192 = vmatmul.mubr.msk.f32.vlgmr.msra.gmra.mxu0 %vm375_vm2, %v876_v28 }
 0x1d9   :  { %v448_v34 = vpop.f32.mrf.mxu1 }
 0x1da   :  { %v1078_v35 = vadd.f32 -1e+12, %v448_v34 }
 0x1db   :  { %v1163_v36 = vpop.f32.mrf.mxu1 }
 0x1dc   :  { %v453_v37 = vsel %vm374_vm3, %v1078_v35, %v448_v34 }
 0x1dd   :  { %v455_v38 = vsel %vm454_vm4, %v453_v37, -inf }
 0x1de   :  { %456 = vmax.xlane.f32.xlu0 %v455_v38 }
 0x24d   :  { %v613_v39 = vpop.f32.mrf.mxu0 }
 0x24e   :  { %v1082_v40 = vadd.f32 -1e+12, %v613_v39 }
 0x24f   :  { %v1173_v41 = vpop.f32.mrf.mxu0 }
 0x250   :  { %v618_v42 = vsel %vm374_vm3, %v1082_v40, %v613_v39 }
 0x251   :  { %v785_v43 = vpop.f32.mrf.mxu0  ;;  %v619_v44 = vsel %vm454_vm4, %v618_v42, -inf }
 0x252   :  { %v1086_v45 = vadd.f32 -1e+12, %v785_v43  ;;  %620 = vmax.xlane.f32.xlu1 %v619_v44 }
 0x253   :  { %v1183_v46 = vpop.f32.mrf.mxu0 }
 0x254   :  { %v790_v47 = vsel %vm374_vm3, %v1086_v45, %v785_v43 }
 0x255   :  { %v949_v48 = vpop.f32.mrf.mxu0  ;;  %v791_v49 = vsel %vm454_vm4, %v790_v47, -inf }
 0x256   :  { %v1090_v50 = vadd.f32 -1e+12, %v949_v48  ;;  %792 = vmax.xlane.f32.xlu0 %v791_v49 }
 0x257   :  { %v1193_v51 = vpop.f32.mrf.mxu0 }
 0x258   :  { %v954_v52 = vsel %vm374_vm3, %v1090_v50, %v949_v48 }
 0x259   :  { %v955_v53 = vsel %vm454_vm4, %v954_v52, -inf }
 0x25a   :  { %956 = vmax.xlane.f32.xlu0 %v955_v53 }
 0x267   :  { %v457_v54 = vpop.xlane.xlu0 %456 }
 0x268   :  { %v458_v55 = vsub.f32 %v453_v37, %v457_v54 }
 0x26a   :  { %v459_v56 = vmul.f32 1.442695, %v458_v55 }
 0x26c   :  { %1212 = vpow2.f32 %v459_v56 }
 0x279   :  { %v1213_v57 = vpop.eup %1212 }
 0x27a   :  { %v461_v58 = vsel %vm454_vm4, %v1213_v57, 0.0 }
 0x27b   :  { %462 = vadd.xlane.f32.xlu1 %v461_v58 }
 0x2db   :  { %v621_v59 = vpop.xlane.xlu1 %620 }
 0x2dc   :  { %v622_v60 = vsub.f32 %v618_v42, %v621_v59 }
 0x2de   :  { %v623_v61 = vmul.f32 1.442695, %v622_v60 }
 0x2df   :  { %v793_v62 = vpop.xlane.xlu0 %792 }
 0x2e0   :  { %1214 = vpow2.f32 %v623_v61  ;;  %v794_v63 = vsub.f32 %v790_v47, %v793_v62 }
 0x2e2   :  { %v795_v0 = vmul.f32 1.442695, %v794_v63 }
 0x2e3   :  { %v957_v1 = vpop.xlane.xlu0 %956 }
 0x2e4   :  { %1216 = vpow2.f32 %v795_v0  ;;  %v958_v2 = vsub.f32 %v954_v52, %v957_v1 }
 0x2e6   :  { %v959_v3 = vmul.f32 1.442695, %v958_v2 }
 0x2e8   :  { %1218 = vpow2.f32 %v959_v3 }
 0x2ed   :  { %v1215_v4 = vpop.eup %1214 }
 0x2ee   :  { %v625_v5 = vsel %vm454_vm4, %v1215_v4, 0.0 }
 0x2ef   :  { %626 = vadd.xlane.f32.xlu0 %v625_v5 }
 0x2f1   :  { %v1217_v6 = vpop.eup %1216 }
 0x2f2   :  { %v797_v7 = vsel %vm454_vm4, %v1217_v6, 0.0 }
 0x2f3   :  { %798 = vadd.xlane.f32.xlu1 %v797_v7 }
 0x2f5   :  { %v1219_v8 = vpop.eup %1218 }
 0x2f6   :  { %v961_v9 = vsel %vm454_vm4, %v1219_v8, 0.0 }
 0x2f7   :  { %962 = vadd.xlane.f32.xlu0 %v961_v9 }
 0x304   :  { %v463_v10 = vpop.xlane.xlu1 %462  ;;  %631 = vrot.lane.b32.xlu1 %v361_v30, %s1388_s4 }
 0x305   :  { %1220 = vrcp.f32 %v463_v10 }
 0x30d   :  { %967 = vrot.lane.b32.xlu0 %v1495_v29, %s1388_s4 }
 0x312   :  { %v1221_v11 = vpop.eup %1220 }
 0x313   :  { %v465_v13 = vmul.f32 %v1221_v11, %v1213_v57 }
 0x315   :  { %1167 = vmatmul.mubr.msk.f32.vlgmr.msra.gmra.mxu1 %vm454_vm4, %v465_v13 }
 0x316   :  { %1176 = vmatprep.mubr.msk.f32.mxu1 %vm1387_vm1, %v1386_v12 }
 0x378   :  { %v627_v14 = vpop.xlane.xlu0 %626 }
 0x379   :  { %1222 = vrcp.f32 %v627_v14 }
 0x37c   :  { %v799_v15 = vpop.xlane.xlu1 %798 }
 0x37d   :  { %1224 = vrcp.f32 %v799_v15 }
 0x380   :  { %v632_v16 = vpop.permute.xlu1 %631  ;;  %v963_v17 = vpop.xlane.xlu0 %962 }
 0x381   :  { %1226 = vrcp.f32 %v963_v17  ;;  %1175 = vmatpush3.msra.mxu1 %v632_v16 }
 0x382   :  { %1184 = vmatprep.subr.mxu1 %v1386_v12 }
 0x384   :  { %v968_v22 = vpop.permute.xlu0 %967 }
 0x386   :  { %v1223_v18 = vpop.eup %1222 }
 0x387   :  { %v629_v19 = vmul.f32 %v1223_v18, %v1215_v4 }
 0x389   :  { %1177 = vmatmul.mubr.msk.f32.vlgmr.msra.gmra.mxu1 %vm454_vm4, %v629_v19 }
 0x38a   :  { %v1225_v20 = vpop.eup %1224  ;;  %1185 = vmatpush3.msra.mxu1 %v1495_v29  ;;  %1186 = vmatprep.mubr.msk.f32.mxu1 %vm1387_vm1, %v1386_v12 }
 0x38b   :  { %1194 = vmatprep.subr.mxu1 %v1386_v12  ;;  %v801_v21 = vmul.f32 %v1225_v20, %v1217_v6 }
 0x38d   :  { %1187 = vmatmul.mubr.msk.f32.vlgmr.msra.gmra.mxu1 %vm454_vm4, %v801_v21 }
 0x38e   :  { %v1227_v23 = vpop.eup %1226  ;;  %1195 = vmatpush3.msra.mxu1 %v968_v22  ;;  %1196 = vmatprep.mubr.msk.f32.mxu1 %vm1387_vm1, %v1386_v12 }
 0x38f   :  { %v965_v24 = vmul.f32 %v1227_v23, %v1219_v8 }
 0x391   :  { %1197 = vmatmul.mubr.msk.f32.vlgmr.msra.gmra.mxu1 %vm454_vm4, %v965_v24 }
 0x3d5   :  { %v535_v25 = vpop.f32.mrf.mxu1 }
 0x3d7   :  { %v1168_v26 = vpop.f32.mrf.mxu1 }
 0x449   :  { %v703_v27 = vpop.f32.mrf.mxu1 }
 0x44a   :  { %708 = vrot.lane.b32.xlu1 %v703_v27, %s1389_s5 }
 0x44b   :  { %v1178_v28 = vpop.f32.mrf.mxu1 }
 0x44d   :  { %v871_v29 = vpop.f32.mrf.mxu1 }
 0x44f   :  { %v1188_v30 = vpop.f32.mrf.mxu1 }
 0x451   :  { %v1039_v31 = vpop.f32.mrf.mxu1 }
 0x452   :  { %1044 = vrot.lane.b32.xlu1 %v1039_v31, %s1389_s5 }
 0x453   :  { %v1198_v32 = vpop.f32.mrf.mxu1 }
 0x4bc   :  { %v709_v33 = vpop.permute.xlu1 %708 }
 0x4bd   :  { %v711_v34 = vsel %vm375_vm2, %v535_v25, %v709_v33 }
 0x4be   :  { %712 = vst.msk [vmem:[#allocation13] sm:$0xff] %vm116_vm0, %v711_v34 }
 0x4c4   :  { %v1045_v12 = vpop.permute.xlu1 %1044 }
 0x4c5   :  { %v1047_v35 = vsel %vm375_vm2, %v871_v29, %v1045_v12 }
 0x4c6   :  { %1049 = vst.msk [vmem:[#allocation13 + $0x8] sm:$0xff] %vm116_vm0, %v1047_v35 }
 0x4c7   :  { %1359 = shalt.err (!%p1356_p6)
}
 0x4c8   :  { %1061 = dma.vmem_to_hbm [thread:$0]  %s1056_s28, 256, %s1542_s6, [#allocation4], %s1380_s26, %s1380_s26, %s1381_s27  }
 0x4c9   :  { %1376 = dma.done.wait [#allocation4], 256  }
 0x4ca   :  { %1377 = vsyncadd [#allocation4], 4294967040 }
 0x4cb   :  { %1065 = vsyncpa [#allocation3], 1 }
 0x4cc   :  { %1066 = vsyncpa [#allocation6], 1 }
 0x4cd   :  { %1067 = vsyncpa [#allocation9], 1 }
 0x4ce   :  { %1068 = vsyncpa [#allocation12], 1 }
 0x4cf   :  { %1069 = vsyncpa [#allocation4], 1 }

</bundles_post_ra>
